<compile_context>
chip_gen: v7x
topology: tpu7x:2x2x1
jax: 0.10.0
libtpu: 0.0.40
codegen_flags: <defaults>
</compile_context>

<pallas_src>
import jax
import jax.numpy as jnp
from jax.experimental import pallas as pl
from jax.experimental.pallas import tpu as pltpu


_LANE = 128            # lane width / MXU tile dim
_SUBLANE_BF16 = 16     # bf16 packs 16 rows per vreg
_VMEM_BUDGET = 24 * 1024 * 1024   # conservative cross-generation working-set budget


def _round_up(x, m):
    return ((x + m - 1) // m) * m


def _rnn_cell_kernel(x_ref, h_ref, wi_ref, wh_ref, b_ref, out_ref):
    """One (tm, tn) output tile: two full-K MXU dots + bias + ReLU epilogue.

    x_ref  : (tm, D_in)   bf16 tile of the input
    h_ref  : (tm, H)      bf16 tile of the previous hidden state
    wi_ref : (D_in, tn)   bf16 tile of Wi^T (N-padded)
    wh_ref : (H, tn)      bf16 tile of Wh^T (N-padded)
    b_ref  : (1, tn)      f32 tile of (bi + bh)
    out    : (tm, tn)     f32
    """
    acc = jnp.dot(x_ref[...], wi_ref[...], preferred_element_type=jnp.float32)
    acc = acc + jnp.dot(h_ref[...], wh_ref[...], preferred_element_type=jnp.float32)
    out_ref[...] = jnp.maximum(acc + b_ref[...], 0.0).astype(out_ref.dtype)


def prepare_rnn_cell_params(wi, bi, wh, bh, *, param_dtype=jnp.bfloat16):
    """One-time parameter preparation (NOT per step).

    wi: (H, D_in), bi: (H,), wh: (H, H), bh: (H,)  -- PyTorch nn.Linear layout.

    Returns:
      wi_t    : (D_in, N_pad) = Wi^T, N zero-padded, cast to param_dtype
      wh_t    : (H,    N_pad) = Wh^T, N zero-padded, cast to param_dtype
      b_fused : (1,    N_pad) = (bi + bh), zero-padded, f32
    """
    hidden_dim, _ = wi.shape
    n_pad = _round_up(hidden_dim, _LANE)
    wi_t = jnp.pad(wi.T, ((0, 0), (0, n_pad - hidden_dim))).astype(param_dtype)
    wh_t = jnp.pad(wh.T, ((0, 0), (0, n_pad - hidden_dim))).astype(param_dtype)
    b_fused = jnp.pad((bi + bh).reshape(1, hidden_dim),
                      ((0, 0), (0, n_pad - hidden_dim))).astype(jnp.float32)
    return wi_t, wh_t, b_fused


@jax.jit
def rnn_cell_step(x, h, wi_t, wh_t, b_fused):
    """One RNN step: ReLU(x @ Wi^T + bi + h @ Wh^T + bh)."""
    B, input_dim = x.shape
    hidden_dim = wh_t.shape[0]
    n_pad = wi_t.shape[1]
    compute_dtype = wi_t.dtype

    # ---- M tiling: big tm (fewer weight re-streams) without gross over-padding.
    r = _round_up(B, _SUBLANE_BF16)
    if r <= 512:
        tm, b_pad = r, r
    else:
        tm, b_pad = None, None
        for cand in (512, 384, 256, 128):
            bp = _round_up(B, cand)
            if b_pad is None or bp < b_pad:
                tm, b_pad = cand, bp

    # ---- N tiling: largest 128-multiple divisor of N_pad (<= 1024) that fits
    # the VMEM working-set budget.
    tn_candidates = [c for c in range(min(n_pad, 1024), _LANE - 1, -_LANE)
                     if n_pad % c == 0]
    if not tn_candidates:
        tn_candidates = [_LANE]

    def working_set_bytes(tm_, tn_):
        act = tm_ * (input_dim + hidden_dim) * 2        # x + h tiles (bf16)
        wgt = (input_dim + hidden_dim) * tn_ * 2        # Wi^T + Wh^T tiles (bf16)
        bias = tn_ * 4                                  # fused bias (f32)
        out = tm_ * tn_ * 4                             # output tile (f32)
        return 2 * (act + wgt + bias + out)             # double-buffered

    tn_idx = 0
    tn = tn_candidates[tn_idx]
    while tn_idx + 1 < len(tn_candidates) and working_set_bytes(tm, tn) > _VMEM_BUDGET:
        tn_idx += 1
        tn = tn_candidates[tn_idx]
    # Megacore (v7x has 2 TensorCores): ensure >= 2 parallel tiles when possible.
    if (b_pad // tm) * (n_pad // tn) < 2 and tn_idx + 1 < len(tn_candidates):
        tn_idx += 1
        tn = tn_candidates[tn_idx]
    # TODO(synk): for very large K = D_in + H (full-K weight tiles no longer
    # fitting VMEM) fall back to a K-tiled grid with an f32 VMEM accumulator.

    grid = (b_pad // tm, n_pad // tn)

    # Only the batch dim of the (small) activations is padded per step; the
    # feature dims stay un-padded (weights carry the exact K extents).
    x_p = jnp.pad(x.astype(compute_dtype), ((0, b_pad - B), (0, 0)))
    h_p = jnp.pad(h.astype(compute_dtype), ((0, b_pad - B), (0, 0)))

    vmem_limit = int(min(max(32 * 1024 * 1024, 2 * working_set_bytes(tm, tn)),
                         56 * 1024 * 1024))

    out_padded = pl.pallas_call(
        _rnn_cell_kernel,
        out_shape=jax.ShapeDtypeStruct((b_pad, n_pad), jnp.float32),
        grid_spec=pltpu.PrefetchScalarGridSpec(
            num_scalar_prefetch=0,
            grid=grid,
            in_specs=[
                pl.BlockSpec((tm, input_dim), lambda i, j: (i, 0)),    # x
                pl.BlockSpec((tm, hidden_dim), lambda i, j: (i, 0)),   # h
                pl.BlockSpec((input_dim, tn), lambda i, j: (0, j)),    # Wi^T
                pl.BlockSpec((hidden_dim, tn), lambda i, j: (0, j)),   # Wh^T
                pl.BlockSpec((1, tn), lambda i, j: (0, j)),            # bi + bh
            ],
            out_specs=pl.BlockSpec((tm, tn), lambda i, j: (i, j)),
        ),
        compiler_params=pltpu.CompilerParams(
            dimension_semantics=("parallel", "parallel"),
            vmem_limit_bytes=vmem_limit,
        ),
    )(x_p, h_p, wi_t, wh_t, b_fused)

    # Drop alignment padding.
    return out_padded[:B, :hidden_dim]


if __name__ == "__main__":
    batch = 2
    input_dim = 16
    hidden_dim = 32

    key = jax.random.PRNGKey(0)
    kx, kh, kwi, kbi, kwh, kbh = jax.random.split(key, 6)

    x = jax.random.normal(kx, (batch, input_dim), dtype=jnp.float32)
    h = jax.random.normal(kh, (batch, hidden_dim), dtype=jnp.float32)

    # Deterministic parameters in PyTorch nn.Linear layout.
    bound_i = 1.0 / (input_dim ** 0.5)
    bound_h = 1.0 / (hidden_dim ** 0.5)
    wi = jax.random.uniform(kwi, (hidden_dim, input_dim), jnp.float32, -bound_i, bound_i)
    bi = jax.random.uniform(kbi, (hidden_dim,), jnp.float32, -bound_i, bound_i)
    wh = jax.random.uniform(kwh, (hidden_dim, hidden_dim), jnp.float32, -bound_h, bound_h)
    bh = jax.random.uniform(kbh, (hidden_dim,), jnp.float32, -bound_h, bound_h)

    # One-time weight fusion / transpose / padding / bf16 cast.
    wi_t, wh_t, b_fused = prepare_rnn_cell_params(wi, bi, wh, bh)

    out = rnn_cell_step(x, h, wi_t, wh_t, b_fused)
    jax.block_until_ready(out)
    assert out.shape == (batch, hidden_dim)

    # Reference with the same bf16-rounded operands, f32 accumulation
    # (verifies the kernel itself; bf16 vs the pure-f32 PyTorch result only
    # introduces the expected ~1e-2 relative drift).
    hp = jax.lax.Precision.HIGHEST
    xb = x.astype(jnp.bfloat16).astype(jnp.float32)
    hb = h.astype(jnp.bfloat16).astype(jnp.float32)
    wib = wi.astype(jnp.bfloat16).astype(jnp.float32)
    whb = wh.astype(jnp.bfloat16).astype(jnp.float32)
    ref = jnp.maximum(
        jnp.dot(xb, wib.T, precision=hp) + bi
        + jnp.dot(hb, whb.T, precision=hp) + bh, 0.0)
    assert jnp.allclose(out, ref, atol=1e-3, rtol=1e-3)

    print("KERNEL_OK")
</pallas_src>

<mosaic_0001>
module attributes {stable_mosaic.version = 11 : i64} {
  func.func @_rnn_cell_kernel(%arg0: i32, %arg1: i32, %arg2: memref<16x16xbf16, #tpu.memory_space<vmem>>, %arg3: memref<16x32xbf16, #tpu.memory_space<vmem>>, %arg4: memref<16x128xbf16, #tpu.memory_space<vmem>>, %arg5: memref<32x128xbf16, #tpu.memory_space<vmem>>, %arg6: memref<1x128xf32, #tpu.memory_space<vmem>>, %arg7: memref<16x128xf32, #tpu.memory_space<vmem>>) attributes {dimension_semantics = [#tpu.dimension_semantics<parallel>, #tpu.dimension_semantics<parallel>], iteration_bounds = array<i64: 1, 1>, scalar_prefetch = 0 : i64, scratch_operands = 0 : i64, tpu.core_type = #tpu.core_type<tc>, window_params = [{transform_indices = @transform_0, window_bounds = array<i64: 16, 16>}, {transform_indices = @transform_1, window_bounds = array<i64: 16, 32>}, {transform_indices = @transform_2, window_bounds = array<i64: 16, 128>}, {transform_indices = @transform_3, window_bounds = array<i64: 32, 128>}, {transform_indices = @transform_4, window_bounds = array<i64: 1, 128>}, {transform_indices = @transform_5, window_bounds = array<i64: 16, 128>}]} {
    %c0 = arith.constant 0 : index
    %c0_0 = arith.constant 0 : index
    %0 = vector.load %arg2[%c0, %c0_0] : memref<16x16xbf16, #tpu.memory_space<vmem>>, vector<16x16xbf16>
    %c0_1 = arith.constant 0 : index
    %c0_2 = arith.constant 0 : index
    %1 = vector.load %arg4[%c0_1, %c0_2] : memref<16x128xbf16, #tpu.memory_space<vmem>>, vector<16x128xbf16>
    %cst = arith.constant dense<0.000000e+00> : vector<16x128xf32>
    %2 = tpu.matmul %0, %1, %cst {dimension_numbers = #tpu.dot_dimension_numbers<[1], [0], [0], [1], [0, 0, 1, 1], [], []>} : vector<16x16xbf16>, vector<16x128xbf16>, vector<16x128xf32> -> vector<16x128xf32>
    %c0_3 = arith.constant 0 : index
    %c0_4 = arith.constant 0 : index
    %3 = vector.load %arg3[%c0_3, %c0_4] : memref<16x32xbf16, #tpu.memory_space<vmem>>, vector<16x32xbf16>
    %c0_5 = arith.constant 0 : index
    %c0_6 = arith.constant 0 : index
    %4 = vector.load %arg5[%c0_5, %c0_6] : memref<32x128xbf16, #tpu.memory_space<vmem>>, vector<32x128xbf16>
    %cst_7 = arith.constant dense<0.000000e+00> : vector<16x128xf32>
    %5 = tpu.matmul %3, %4, %cst_7 {dimension_numbers = #tpu.dot_dimension_numbers<[1], [0], [0], [1], [0, 0, 1, 1], [], []>} : vector<16x32xbf16>, vector<32x128xbf16>, vector<16x128xf32> -> vector<16x128xf32>
    %6 = arith.addf %2, %5 : vector<16x128xf32>
    %c0_8 = arith.constant 0 : index
    %c0_9 = arith.constant 0 : index
    %7 = vector.load %arg6[%c0_8, %c0_9] : memref<1x128xf32, #tpu.memory_space<vmem>>, vector<1x128xf32>
    %8 = vector.broadcast %7 : vector<1x128xf32> to vector<16x128xf32>
    %9 = arith.addf %6, %8 : vector<16x128xf32>
    %cst_10 = arith.constant 0.000000e+00 : f32
    %10 = vector.broadcast %cst_10 : f32 to vector<16x128xf32>
    %11 = arith.maximumf %9, %10 : vector<16x128xf32>
    %c0_11 = arith.constant 0 : index
    %c0_12 = arith.constant 0 : index
    %12 = vector.load %arg7[%c0_11, %c0_12] : memref<16x128xf32, #tpu.memory_space<vmem>>, vector<16x128xf32>
    tpu.vector_store %arg7[%c0_11, %c0_12], %11 {strides = array<i32>} : memref<16x128xf32, #tpu.memory_space<vmem>>, vector<16x128xf32>,
    return
  }
  func.func @transform_0(%arg0: i32, %arg1: i32) -> (i32, i32) {
    %c0_i32 = arith.constant 0 : i32
    %c0_i32_0 = arith.constant 0 : i32
    return %arg0, %c0_i32 : i32, i32
  }
  func.func @transform_1(%arg0: i32, %arg1: i32) -> (i32, i32) {
    %c0_i32 = arith.constant 0 : i32
    %c0_i32_0 = arith.constant 0 : i32
    return %arg0, %c0_i32 : i32, i32
  }
  func.func @transform_2(%arg0: i32, %arg1: i32) -> (i32, i32) {
    %c0_i32 = arith.constant 0 : i32
    %c0_i32_0 = arith.constant 0 : i32
    return %c0_i32, %arg1 : i32, i32
  }
  func.func @transform_3(%arg0: i32, %arg1: i32) -> (i32, i32) {
    %c0_i32 = arith.constant 0 : i32
    %c0_i32_0 = arith.constant 0 : i32
    return %c0_i32, %arg1 : i32, i32
  }
  func.func @transform_4(%arg0: i32, %arg1: i32) -> (i32, i32) {
    %c0_i32 = arith.constant 0 : i32
    %c0_i32_0 = arith.constant 0 : i32
    return %c0_i32, %arg1 : i32, i32
  }
  func.func @transform_5(%arg0: i32, %arg1: i32) -> (i32, i32) {
    %c0_i32 = arith.constant 0 : i32
    return %arg0, %arg1 : i32, i32
  }
}

</mosaic_0001>

<bundles_post_ra>
// kernel: rnn_cell_step.1
= control target key start
LH: loop header
LB: loop body
LE: loop exit
PB: predicated region body
PF: predicated region fallthrough
CT: control target
= control target key end

     0   :  { %v200_v0 = vmov 0.0   ;;  %vm201_vm0 = vmmov 0   ;;  %vm104_vm1 = vcmask 130048   ;;  %vm48_vm2 = vcmask 261120   ;;  %s256_s3 = inlined_call_operand.vmem [shape: bf16[32,128], index: 3, kind: input, shape index: {}]   ;;  %s257_s2 = inlined_call_operand.vmem [shape: bf16[16,128], index: 2, kind: input, shape index: {}]   ;;  %s258_s0 = inlined_call_operand.vmem [shape: bf16[16,16], index: 0, kind: input, shape index: {}]   ;;  %s259_s1 = inlined_call_operand.vmem [shape: bf16[16,32], index: 1, kind: input, shape index: {}]   ;;  %s260_s4 = inlined_call_operand.vmem [shape: f32[1,128], index: 4, kind: input, shape index: {}]   ;;  %s261_s5 = inlined_call_operand.vmem [shape: f32[16,128], index: 5, kind: output, shape index: {}]  }
   0x1   :  { %179 = vmatprep.subr.bf16.mxu0 %v200_v0  ;;  %v195_v1 = vld [vmem:[%s256_s3] sm:$0xff]   ;;  %187 = vmatprep.subr.bf16.mxu1 %v200_v0  ;;  %v197_v3 = vld [vmem:[%s256_s3 + $0x8] sm:$0xff]  }
   0x2   :  { %v196_v2 = vld [vmem:[%s257_s2] sm:$0xff]   ;;  %189 = vmatprep.mubr.msk.bf16.mxu1 %vm201_vm0, %v200_v0  ;;  %183 = vmatprep.mubr.msk.bf16.mxu0 %vm201_vm0, %v200_v0 }
   0x3   :  { %180 = vmatpush3.bf16.msra.mxu0 %v195_v1  ;;  %188 = vmatpush3.bf16.msra.mxu1 %v196_v2  ;;  %v198_v4 = vld [vmem:[%s258_s0] sm:$0xff]  }
   0x4   :  { %181 = vmatprep.subr.bf16.mxu0 %v200_v0  ;;  %v199_v5 = vld [vmem:[%s259_s1] sm:$0xff]  }
   0x5   :  { %v173_v10 = vld [vmem:[%s260_s4] ss:$0 sm:$0xff] }
   0x6   :  { %190 = vmatmul.mubr.msk.bf16.vlgmr.msra.gmra.mrb[0].mxu1 %vm104_vm1, %v198_v4 }
   0x7   :  { %182 = vmatpush3.bf16.msra.mxu0 %v197_v3 }
   0xa   :  { %184 = vmatmul.mubr.msk.bf16.vlgmr.msra.gmra.mrb[0].mxu0 %vm48_vm2, %v199_v5 }
  0xd9   :  { %v142_v6 = vpop.f32.mrb[0].mxu1 }
  0xda   :  { %v191_v7 = vpop.f32.mrb[1].mxu1 }
  0xdb   :  { %v145_v8 = vpop.f32.mrb[2].mxu1 }
  0xdc   :  { %v192_v11 = vpop.f32.mrb[3].mxu1 }
  0xdd   :  { %v86_v9 = vpop.f32.mrb[0].mxu0 }
  0xde   :  { %v143_v12 = vadd.f32 %v142_v6, %v86_v9  ;;  %v185_v13 = vpop.f32.mrb[1].mxu0 }
  0xdf   :  { %v89_v14 = vpop.f32.mrb[2].mxu0 }
  0xe0   :  { %v156_v15 = vadd.f32 %v173_v10, %v143_v12  ;;  %v146_v16 = vadd.f32 %v145_v8, %v89_v14  ;;  %v186_v17 = vpop.f32.mrb[3].mxu0 }
  0xe2   :  { %v158_v18 = vmax.f32 %v156_v15, 0.0  ;;  %v157_v19 = vadd.f32 %v173_v10, %v146_v16 }
  0xe4   :  { %160 = vst [vmem:[%s261_s5] sm:$0xff] %v158_v18  ;;  %v159_v20 = vmax.f32 %v157_v19, 0.0 }
  0xe6   :  { %161 = vst [vmem:[%s261_s5 + $0x8] sm:$0xff] %v159_v20 }

</bundles_post_ra>
